<compile_context>
chip_gen: v5e
topology: v5e:2x2
jax: 0.10.0
libtpu: 0.0.40
codegen_flags: <defaults>
</compile_context>

<pallas_src>
import functools
import math

import jax
import jax.numpy as jnp
from jax.experimental import pallas as pl
from jax.experimental.pallas import tpu as pltpu


def _cdiv(a, b):
    return -(-a // b)


def _round_up(n, m):
    return _cdiv(n, m) * m


def _vmem_capacity_bytes():
    # v5e/v6e: 128 MiB per core, v7x: 64 MiB. Conservative fallback if the
    # query is unavailable.
    try:
        return int(pltpu.get_tpu_info().vmem_capacity_bytes)
    except Exception:
        return 64 * 1024 * 1024


def _plan_feature_tiling(in_features, out_features, vmem_budget):
    """Lane-dense padded feature sizes and the out-feature tile width tn."""
    in_p = _round_up(in_features, 128)
    out_p = _round_up(out_features, 128)
    # Weight slab per grid step: [in_p, 2*tn] (G|W) + [in_p, tn] (M), f32,
    # double-buffered by the pipeline -> 24 * in_p * tn bytes.
    cands = sorted({c for c in (out_p, 512, 256, 128) if out_p % c == 0},
                   reverse=True)
    tn = cands[-1]
    for c in cands:
        if 24 * in_p * c <= vmem_budget // 2:
            tn = c
            break
    return in_p, out_p, tn


def _plan_batch_tiling(batch, in_p, tn, n_ot, vmem_budget):
    """Batch tile tb (multiple of 8, minimal padding) and tile count."""
    max_tb = 256
    # Guarantee >= 2 total grid steps when the out axis has a single tile, so
    # the pipeline overlaps DMA with compute and v7x can use both TensorCores.
    if n_ot == 1 and batch >= 16:
        max_tb = min(max_tb, _round_up(_cdiv(batch, 2), 8))
    n_bt = max(1, _cdiv(batch, max_tb))
    tb = _round_up(_cdiv(batch, n_bt), 8)
    # Keep per-step batch-side VMEM (x + log|x| + fused gw + out, with double
    # buffering on pipelined buffers) within the remaining budget.
    row_bytes = 4 * (3 * in_p + 8 * tn)
    rem = max(vmem_budget - 24 * in_p * tn, 0)
    while tb > 8 and tb * row_bytes > rem:
        tb = _round_up(tb // 2, 8)
    n_bt = _cdiv(batch, tb)
    return tb, n_bt


def _pack_weights(G, W, M, in_features, out_features, in_p, out_p, tn):
    """Transpose, zero-pad, and interleave [G^T | W^T] per out tile."""
    f32 = jnp.float32

    def pad_t(A):
        return jnp.pad(jnp.asarray(A, f32).T,
                       ((0, in_p - in_features), (0, out_p - out_features)))

    Gt, Wt, Mt = pad_t(G), pad_t(W), pad_t(M)
    n_ot = out_p // tn
    # Columns [j*2tn : j*2tn+tn] = G^T tile j, [j*2tn+tn : (j+1)*2tn] = W^T tile j.
    GWt = jnp.concatenate(
        [Gt.reshape(in_p, n_ot, tn), Wt.reshape(in_p, n_ot, tn)], axis=2
    ).reshape(in_p, 2 * out_p)
    return GWt, Mt


def _nalu_kernel(x_ref, gwt_ref, mt_ref, o_ref, *, eps, tn, precision):
    # VMEM tiles:
    #   x_ref   : [tb, in_p]     (batch tile, lane-dense K)
    #   gwt_ref : [in_p, 2*tn]   ([G^T | W^T] column slab for this out tile)
    #   mt_ref  : [in_p, tn]     (M^T column slab)
    #   o_ref   : [tb, tn]
    x = x_ref[...]

    # Fused gate + additive matmul, split on a 128-lane boundary.
    gw = jnp.dot(x, gwt_ref[...], preferred_element_type=jnp.float32,
                 precision=precision)
    z = gw[:, :tn]
    a = gw[:, tn:]
    # sigmoid(z) == 0.5 * tanh(0.5*z) + 0.5  -> one EUP push instead of two.
    g = 0.5 * jnp.tanh(0.5 * z) + 0.5

    # Multiplicative path in log-space.  Padded x columns are 0 -> log(eps),
    # but the matching M^T rows are zero, so they contribute exactly 0.
    log_x = jnp.log(jnp.abs(x) + eps)
    m = jnp.exp(jnp.dot(log_x, mt_ref[...], preferred_element_type=jnp.float32,
                        precision=precision))

    # y = g*a + (1-g)*m  ==  m + g*(a - m)
    o_ref[...] = (m + g * (a - m)).astype(o_ref.dtype)


def _nalu_forward_packed(x, GWt, Mt, *, in_features, out_features, in_p, out_p,
                         tn, eps, vmem_budget, vmem_capacity, precision=None):
    batch = x.shape[0]
    n_ot = out_p // tn
    tb, n_bt = _plan_batch_tiling(batch, in_p, tn, n_ot, vmem_budget)
    batch_p = tb * n_bt

    x_p = jnp.asarray(x, jnp.float32)
    if batch_p > batch:
        # Pad rows with 1.0: log(1 + eps) ~ 0 keeps the exp path benign.
        # (Padded rows/columns are sliced away below; nothing reduces over them.)
        x_p = jnp.pad(x_p, ((0, batch_p - batch), (0, 0)), constant_values=1.0)
    if in_p > in_features:
        x_p = jnp.pad(x_p, ((0, 0), (0, in_p - in_features)))

    kernel = functools.partial(_nalu_kernel, eps=eps, tn=tn, precision=precision)

    # Generation-aware VMEM limit: actual footprint + headroom, capped well
    # under the queried physical capacity (64 MiB on v7x, 128 MiB on v5e/v6e).
    footprint = 24 * in_p * tn + tb * 4 * (3 * in_p + 8 * tn)
    vmem_limit = int(min(0.8 * vmem_capacity, footprint + 16 * 1024 * 1024))
    vmem_limit = max(vmem_limit, 32 * 1024 * 1024)

    flops = 6 * batch_p * in_p * out_p + 6 * batch_p * out_p
    transcendentals = batch_p * in_p * n_ot + 2 * batch_p * out_p
    bytes_accessed = 4 * (n_ot * batch_p * in_p + n_bt * 3 * in_p * out_p
                          + batch_p * out_p)

    y_p = pl.pallas_call(
        kernel,
        out_shape=jax.ShapeDtypeStruct((batch_p, out_p), jnp.float32),
        grid_spec=pltpu.PrefetchScalarGridSpec(
            num_scalar_prefetch=0,
            grid=(n_bt, n_ot),
            in_specs=[
                pl.BlockSpec((tb, in_p), lambda i, j: (i, 0)),
                # Weight slabs stream along the inner out-tile axis (reused
                # across the batch axis).
                # TODO(synk): when n_ot == 1 these blocks are grid-constant;
                # single-buffering them (pipeline_mode=pl.Buffered(1)) would
                # halve their VMEM residency.
                pl.BlockSpec((in_p, 2 * tn), lambda i, j: (0, j)),
                pl.BlockSpec((in_p, tn), lambda i, j: (0, j)),
            ],
            out_specs=pl.BlockSpec((tb, tn), lambda i, j: (i, j)),
        ),
        compiler_params=pltpu.CompilerParams(
            dimension_semantics=("parallel", "parallel"),
            vmem_limit_bytes=vmem_limit,
        ),
        cost_estimate=pl.CostEstimate(
            flops=flops,
            transcendentals=transcendentals,
            bytes_accessed=bytes_accessed,
        ),
    )(x_p, GWt, Mt)

    return y_p[:batch, :out_features]


def make_nalu_forward(G, W, M, eps=1e-7, *, matmul_precision=None):
    """Pack NALU weights once (hoisted off the hot path) and return a jitted
    forward(x) callable.  G/W/M follow PyTorch convention [out, in]."""
    G = jnp.asarray(G, jnp.float32)
    out_features, in_features = G.shape
    eps = max(float(eps), float(jnp.finfo(jnp.float32).tiny))

    vmem_capacity = _vmem_capacity_bytes()
    vmem_budget = int(vmem_capacity * 0.6)

    in_p, out_p, tn = _plan_feature_tiling(in_features, out_features, vmem_budget)
    GWt, Mt = _pack_weights(G, W, M, in_features, out_features, in_p, out_p, tn)

    fwd = jax.jit(functools.partial(
        _nalu_forward_packed,
        in_features=in_features, out_features=out_features,
        in_p=in_p, out_p=out_p, tn=tn, eps=eps,
        vmem_budget=vmem_budget, vmem_capacity=vmem_capacity,
        precision=matmul_precision))

    def forward(x):
        return fwd(x, GWt, Mt)

    return forward


def nalu_forward(x, G, W, M, eps=1e-7):
    """One-shot convenience wrapper (packs weights on every call)."""
    return make_nalu_forward(G, W, M, eps)(x)


def _kaiming_uniform(key, shape, a=math.sqrt(5)):
    # Matches nn.init.kaiming_uniform_ for a 2-D weight [out, in].
    fan_in = shape[1]
    gain = math.sqrt(2.0 / (1.0 + a * a))
    bound = gain * math.sqrt(3.0 / fan_in)
    return jax.random.uniform(key, shape, jnp.float32, minval=-bound, maxval=bound)


def _nalu_reference(x, G, W, M, eps):
    g = jax.nn.sigmoid(x @ G.T)
    a = x @ W.T
    m = jnp.exp(jnp.log(jnp.abs(x) + eps) @ M.T)
    return g * a + (1.0 - g) * m


if __name__ == "__main__":
    # Small shapes consistent with the module: batch=8, in=32, out=32.
    batch, in_features, out_features = 8, 32, 32
    eps = 1e-7

    key = jax.random.PRNGKey(0)
    kx, kg, kw, km = jax.random.split(key, 4)

    x = jax.random.normal(kx, (batch, in_features), jnp.float32)
    G = _kaiming_uniform(kg, (out_features, in_features))
    W = _kaiming_uniform(kw, (out_features, in_features))
    M = _kaiming_uniform(km, (out_features, in_features))

    forward = make_nalu_forward(G, W, M, eps)   # weight packing hoisted, jitted fwd
    y = forward(x)
    y = jax.block_until_ready(y)

    eps_c = max(eps, float(jnp.finfo(jnp.float32).tiny))
    y_ref = _nalu_reference(x, G, W, M, eps_c)
    assert y.shape == (batch, out_features)
    assert jnp.allclose(y, y_ref, atol=1e-4, rtol=1e-4), "mismatch vs reference"

    print("KERNEL_OK")
</pallas_src>

<mosaic_0001>
module attributes {stable_mosaic.version = 11 : i64} {
  func.func @_nalu_kernel(%arg0: i32, %arg1: i32, %arg2: memref<8x128xf32, #tpu.memory_space<vmem>>, %arg3: memref<128x256xf32, #tpu.memory_space<vmem>>, %arg4: memref<128x128xf32, #tpu.memory_space<vmem>>, %arg5: memref<8x128xf32, #tpu.memory_space<vmem>>) attributes {dimension_semantics = [#tpu.dimension_semantics<parallel>, #tpu.dimension_semantics<parallel>], iteration_bounds = array<i64: 1, 1>, scalar_prefetch = 0 : i64, scratch_operands = 0 : i64, tpu.core_type = #tpu.core_type<tc>, window_params = [{transform_indices = @transform_0, window_bounds = array<i64: 8, 128>}, {transform_indices = @transform_1, window_bounds = array<i64: 128, 256>}, {transform_indices = @transform_2, window_bounds = array<i64: 128, 128>}, {transform_indices = @transform_3, window_bounds = array<i64: 8, 128>}]} {
    %c0 = arith.constant 0 : index
    %c0_0 = arith.constant 0 : index
    %0 = vector.load %arg2[%c0, %c0_0] : memref<8x128xf32, #tpu.memory_space<vmem>>, vector<8x128xf32>
    %c0_1 = arith.constant 0 : index
    %c0_2 = arith.constant 0 : index
    %1 = vector.load %arg3[%c0_1, %c0_2] : memref<128x256xf32, #tpu.memory_space<vmem>>, vector<128x256xf32>
    %cst = arith.constant dense<0.000000e+00> : vector<8x256xf32>
    %2 = tpu.matmul %0, %1, %cst {dimension_numbers = #tpu.dot_dimension_numbers<[1], [0], [0], [1], [0, 0, 1, 1], [], []>} : vector<8x128xf32>, vector<128x256xf32>, vector<8x256xf32> -> vector<8x256xf32>
    %3 = vector.extract_strided_slice %2 {offsets = [0, 0], sizes = [8, 128], strides = [1, 1]} : vector<8x256xf32> to vector<8x128xf32>
    %4 = vector.extract_strided_slice %2 {offsets = [0, 128], sizes = [8, 128], strides = [1, 1]} : vector<8x256xf32> to vector<8x128xf32>
    %cst_3 = arith.constant 5.000000e-01 : f32
    %5 = vector.broadcast %cst_3 : f32 to vector<8x128xf32>
    %6 = arith.mulf %5, %3 : vector<8x128xf32>
    %7 = math.tanh %6 : vector<8x128xf32>
    %cst_4 = arith.constant 5.000000e-01 : f32
    %8 = vector.broadcast %cst_4 : f32 to vector<8x128xf32>
    %9 = arith.mulf %8, %7 : vector<8x128xf32>
    %cst_5 = arith.constant 5.000000e-01 : f32
    %10 = vector.broadcast %cst_5 : f32 to vector<8x128xf32>
    %11 = arith.addf %9, %10 : vector<8x128xf32>
    %12 = math.absf %0 : vector<8x128xf32>
    %cst_6 = arith.constant 1.000000e-07 : f32
    %13 = vector.broadcast %cst_6 : f32 to vector<8x128xf32>
    %14 = arith.addf %12, %13 : vector<8x128xf32>
    %15 = math.log %14 : vector<8x128xf32>
    %c0_7 = arith.constant 0 : index
    %c0_8 = arith.constant 0 : index
    %16 = vector.load %arg4[%c0_7, %c0_8] : memref<128x128xf32, #tpu.memory_space<vmem>>, vector<128x128xf32>
    %cst_9 = arith.constant dense<0.000000e+00> : vector<8x128xf32>
    %17 = tpu.matmul %15, %16, %cst_9 {dimension_numbers = #tpu.dot_dimension_numbers<[1], [0], [0], [1], [0, 0, 1, 1], [], []>} : vector<8x128xf32>, vector<128x128xf32>, vector<8x128xf32> -> vector<8x128xf32>
    %18 = math.exp %17 : vector<8x128xf32>
    %19 = arith.subf %4, %18 : vector<8x128xf32>
    %20 = arith.mulf %11, %19 : vector<8x128xf32>
    %21 = arith.addf %18, %20 : vector<8x128xf32>
    %c0_10 = arith.constant 0 : index
    %c0_11 = arith.constant 0 : index
    %22 = vector.load %arg5[%c0_10, %c0_11] : memref<8x128xf32, #tpu.memory_space<vmem>>, vector<8x128xf32>
    tpu.vector_store %arg5[%c0_10, %c0_11], %21 {strides = array<i32>} : memref<8x128xf32, #tpu.memory_space<vmem>>, vector<8x128xf32>,
    return
  }
  func.func @transform_0(%arg0: i32, %arg1: i32) -> (i32, i32) {
    %c0_i32 = arith.constant 0 : i32
    %c0_i32_0 = arith.constant 0 : i32
    return %arg0, %c0_i32 : i32, i32
  }
  func.func @transform_1(%arg0: i32, %arg1: i32) -> (i32, i32) {
    %c0_i32 = arith.constant 0 : i32
    %c0_i32_0 = arith.constant 0 : i32
    return %c0_i32, %arg1 : i32, i32
  }
  func.func @transform_2(%arg0: i32, %arg1: i32) -> (i32, i32) {
    %c0_i32 = arith.constant 0 : i32
    %c0_i32_0 = arith.constant 0 : i32
    return %c0_i32, %arg1 : i32, i32
  }
  func.func @transform_3(%arg0: i32, %arg1: i32) -> (i32, i32) {
    %c0_i32 = arith.constant 0 : i32
    return %arg0, %arg1 : i32, i32
  }
}

</mosaic_0001>

<bundles_post_ra>
// kernel: _nalu_forward_packed.1
= control target key start
LH: loop header
LB: loop body
LE: loop exit
PB: predicated region body
PF: predicated region fallthrough
CT: control target
= control target key end

     0   :  { %8 = vsyncpa [#allocation3], 0  ;;  %s323_s0 = inlined_call_operand.vmem [shape: f32[8,128], index: 0, kind: input, shape index: {}]   ;;  %s324_s1 = inlined_call_operand.hbm [shape: f32[128,256], index: 1, kind: input, shape index: {}]   ;;  %s325_s2 = inlined_call_operand.hbm [shape: f32[128,128], index: 2, kind: input, shape index: {}]   ;;  %s326_s3 = inlined_call_operand.hbm [shape: f32[8,128], index: 3, kind: output, shape index: {}]  }
   0x1   :  { %9 = vsyncpa [#allocation6], 0 }
   0x2   :  { %10 = vsyncpa [#allocation4], 0  ;;  %s17_s14 = sshll.u32 %s324_s1, 4  ;;  %s279_s15 = smov [#allocation2]   ;;  %s18_s14 = int_to_ptr.hbm [resolvable:$true] %s17_s14 }
   0x3   :  { %s19_s16 = sshll.u32 %s279_s15, 4  ;;  %s30_s19 = sshll.u32 %s325_s2, 4  ;;  %s20_s16 = int_to_ptr.vmem [resolvable:$true] %s19_s16  ;;  %s31_s19 = int_to_ptr.hbm [resolvable:$true] %s30_s19 }
   0x4   :  { %s280_s20 = smov 256   ;;  %s281_s21 = smov 16  }
   0x5   :  { %25 = dma.hbm_to_vmem [thread:$0]  %s18_s14, 4096, %s20_s16, [#allocation3], %s280_s20, %s280_s20, %s281_s21  }
   0x6   :  { %s282_s22 = smov [#allocation5]   ;;  %s283_s24 = smov 128  }
   0x7   :  { %s32_s23 = sshll.u32 %s282_s22, 4  ;;  %s284_s25 = smov 8   ;;  %s33_s23 = int_to_ptr.vmem [resolvable:$true] %s32_s23 }
   0x8   :  { %38 = dma.hbm_to_vmem [thread:$0]  %s31_s19, 2048, %s33_s23, [#allocation6], %s283_s24, %s283_s24, %s284_s25  }
   0x9   :  { %273 = dma.done.wait [#allocation3], 4096  }
   0xa   :  { %274 = vsyncadd [#allocation3], 4294963200 }
   0xb   :  { %275 = dma.done.wait [#allocation6], 2048  }
   0xc   :  { %276 = vsyncadd [#allocation6], 4294965248  ;;  %v143_v0 = vld [vmem:[#allocation5 + $0x78] sm:$0xff]  ;;  %v142_v1 = vld [vmem:[#allocation5 + $0x70] sm:$0xff]  ;;  %s177_s29 = sshll.u32 %s326_s3, 4  ;;  %s178_s29 = int_to_ptr.hbm [resolvable:$true] %s177_s29 }
   0xd   :  { %v78_v2 = vld [vmem:[#allocation2 + $0xf0] sm:$0xff]  ;;  %144 = vmatpush.msra.mxu2 %v143_v0  ;;  %v76_v3 = vld [vmem:[#allocation2 + $0xe0] sm:$0xff]  ;;  %v141_v4 = vld [vmem:[#allocation5 + $0x68] sm:$0xff] }
   0xe   :  { %80 = vmatpush.msra.mxu0 %v78_v2  ;;  %v74_v5 = vld [vmem:[#allocation2 + $0xd0] sm:$0xff]  ;;  %v140_v6 = vld [vmem:[#allocation5 + $0x60] sm:$0xff]  ;;  %v79_v8 = vld [vmem:[#allocation2 + $0xf8] sm:$0xff] }
   0xf   :  { %145 = vmatpush.msra.mxu2 %v142_v1  ;;  %v72_v7 = vld [vmem:[#allocation2 + $0xc0] sm:$0xff]  ;;  %v77_v9 = vld [vmem:[#allocation2 + $0xe8] sm:$0xff]  ;;  %v139_v10 = vld [vmem:[#allocation5 + $0x58] sm:$0xff]  ;;  %100 = vmatpush.msra.mxu1 %v79_v8 }
  0x10   :  { %81 = vmatpush.msra.mxu0 %v76_v3  ;;  %v70_v11 = vld [vmem:[#allocation2 + $0xb0] sm:$0xff]  ;;  %v75_v12 = vld [vmem:[#allocation2 + $0xd8] sm:$0xff]  ;;  %v68_v14 = vld [vmem:[#allocation2 + $0xa0] sm:$0xff] }
  0x11   :  { %146 = vmatpush.msra.mxu2 %v141_v4  ;;  %v138_v13 = vld [vmem:[#allocation5 + $0x50] sm:$0xff]  ;;  %101 = vmatpush.msra.mxu1 %v77_v9  ;;  %v73_v15 = vld [vmem:[#allocation2 + $0xc8] sm:$0xff]  ;;  %v71_v18 = vld [vmem:[#allocation2 + $0xb8] sm:$0xff] }
  0x12   :  { %82 = vmatpush.msra.mxu0 %v74_v5  ;;  %v137_v16 = vld [vmem:[#allocation5 + $0x48] sm:$0xff]  ;;  %v66_v17 = vld [vmem:[#allocation2 + $0x90] sm:$0xff]  ;;  %v136_v19 = vld [vmem:[#allocation5 + $0x40] sm:$0xff] }
  0x13   :  { %147 = vmatpush.msra.mxu2 %v140_v6  ;;  %102 = vmatpush.msra.mxu1 %v75_v12  ;;  %v64_v20 = vld [vmem:[#allocation2 + $0x80] sm:$0xff]  ;;  %v69_v21 = vld [vmem:[#allocation2 + $0xa8] sm:$0xff]  ;;  %v135_v23 = vld [vmem:[#allocation5 + $0x38] sm:$0xff] }
  0x14   :  { %83 = vmatpush.msra.mxu0 %v72_v7  ;;  %v315_v22 = vld [vmem:[%s323_s0] sm:$0xff]  ;;  %v62_v24 = vld [vmem:[#allocation2 + $0x70] sm:$0xff]  ;;  %v67_v26 = vld [vmem:[#allocation2 + $0x98] sm:$0xff]  ;;  %s285_s0 = smov [#allocation7]  }
  0x15   :  { %148 = vmatpush.msra.mxu2 %v139_v10  ;;  %103 = vmatpush.msra.mxu1 %v73_v15  ;;  %v124_v25 = vand.u32 2147483647, %v315_v22  ;;  %v134_v27 = vld [vmem:[#allocation5 + $0x30] sm:$0xff]  ;;  %v60_v28 = vld [vmem:[#allocation2 + $0x60] sm:$0xff]  ;;  %v65_v30 = vld [vmem:[#allocation2 + $0x88] sm:$0xff]  ;;  %s175_s26 = sshll.u32 %s285_s0, 4  ;;  %s176_s26 = int_to_ptr.vmem [resolvable:$true] %s175_s26 }
  0x16   :  { %84 = vmatpush.msra.mxu0 %v70_v11  ;;  %v133_v31 = vld [vmem:[#allocation5 + $0x28] sm:$0xff]  ;;  %v58_v32 = vld [vmem:[#allocation2 + $0x50] sm:$0xff]  ;;  %v63_v33 = vld [vmem:[#allocation2 + $0x78] sm:$0xff] }
  0x17   :  { %149 = vmatpush.msra.mxu2 %v138_v13  ;;  %104 = vmatpush.msra.mxu1 %v71_v18  ;;  %v125_v29 = vadd.f32 1e-07, %v124_v25  ;;  %v132_v34 = vld [vmem:[#allocation5 + $0x20] sm:$0xff]  ;;  %v61_v36 = vld [vmem:[#allocation2 + $0x68] sm:$0xff]  ;;  %v131_v37 = vld [vmem:[#allocation5 + $0x18] sm:$0xff] }
  0x18   :  { %85 = vmatpush.msra.mxu0 %v68_v14  ;;  %v56_v35 = vld [vmem:[#allocation2 + $0x40] sm:$0xff]  ;;  %v54_v38 = vld [vmem:[#allocation2 + $0x30] sm:$0xff]  ;;  %v59_v39 = vld [vmem:[#allocation2 + $0x58] sm:$0xff] }
  0x19   :  { %150 = vmatpush.msra.mxu2 %v137_v16  ;;  %105 = vmatpush.msra.mxu1 %v69_v21  ;;  %195 = vlog2.f32 %v125_v29  ;;  %v130_v40 = vld [vmem:[#allocation5 + $0x10] sm:$0xff]  ;;  %v52_v41 = vld [vmem:[#allocation2 + $0x20] sm:$0xff]  ;;  %v57_v43 = vld [vmem:[#allocation2 + $0x48] sm:$0xff] }
  0x1a   :  { %86 = vmatpush.msra.mxu0 %v66_v17  ;;  %v129_v44 = vld [vmem:[#allocation5 + $0x8] sm:$0xff]  ;;  %v50_v45 = vld [vmem:[#allocation2 + $0x10] sm:$0xff]  ;;  %v55_v46 = vld [vmem:[#allocation2 + $0x38] sm:$0xff] }
  0x1b   :  { %151 = vmatpush.msra.mxu2 %v136_v19  ;;  %106 = vmatpush.msra.mxu1 %v67_v26  ;;  %v128_v47 = vld [vmem:[#allocation5] sm:$0xff]  ;;  %v53_v50 = vld [vmem:[#allocation2 + $0x28] sm:$0xff]  ;;  %v51_v51 = vld [vmem:[#allocation2 + $0x18] sm:$0xff] }
  0x1c   :  { %87 = vmatpush.msra.mxu0 %v64_v20  ;;  %v48_v49 = vld [vmem:[#allocation2] sm:$0xff]  ;;  %v49_v52 = vld [vmem:[#allocation2 + $0x8] sm:$0xff] }
  0x1d   :  { %152 = vmatpush.msra.mxu2 %v135_v23  ;;  %107 = vmatpush.msra.mxu1 %v65_v30 }
  0x1e   :  { %88 = vmatpush.msra.mxu0 %v62_v24 }
  0x1f   :  { %153 = vmatpush.msra.mxu2 %v134_v27  ;;  %108 = vmatpush.msra.mxu1 %v63_v33  ;;  %v196_v42 = vpop.eup %195 }
  0x20   :  { %89 = vmatpush.msra.mxu0 %v60_v28  ;;  %v127_v48 = vmul.f32 0.6931472, %v196_v42 }
  0x21   :  { %154 = vmatpush.msra.mxu2 %v133_v31  ;;  %109 = vmatpush.msra.mxu1 %v61_v36 }
  0x22   :  { %90 = vmatpush.msra.mxu0 %v58_v32 }
  0x23   :  { %155 = vmatpush.msra.mxu2 %v132_v34  ;;  %110 = vmatpush.msra.mxu1 %v59_v39 }
  0x24   :  { %91 = vmatpush.msra.mxu0 %v56_v35 }
  0x25   :  { %156 = vmatpush.msra.mxu2 %v131_v37  ;;  %111 = vmatpush.msra.mxu1 %v57_v43 }
  0x26   :  { %92 = vmatpush.msra.mxu0 %v54_v38 }
  0x27   :  { %157 = vmatpush.msra.mxu2 %v130_v40  ;;  %112 = vmatpush.msra.mxu1 %v55_v46 }
  0x28   :  { %93 = vmatpush.msra.mxu0 %v52_v41 }
  0x29   :  { %158 = vmatpush.msra.mxu2 %v129_v44  ;;  %113 = vmatpush.msra.mxu1 %v53_v50 }
  0x2a   :  { %94 = vmatpush.msra.mxu0 %v50_v45 }
  0x2b   :  { %159 = vmatpush.msra.mxu2 %v128_v47  ;;  %114 = vmatpush.msra.mxu1 %v51_v51 }
  0x2c   :  { %95 = vmatpush.msra.mxu0 %v48_v49  ;;  %160 = vmatmul.f32.vlgmr.msra.gmra.mxu2 %v127_v48 }
  0x2d   :  { %96 = vmatmul.f32.vlgmr.msra.gmra.mxu0 %v315_v22  ;;  %115 = vmatpush.msra.mxu1 %v49_v52 }
  0x2e   :  { %116 = vmatmul.f32.vlgmr.msra.gmra.mxu1 %v315_v22 }
  0xaa   :  { %v97_v53 = vpop.f32.mrf.mxu0 }
  0xab   :  { %v120_v54 = vmul.f32 0.5, %v97_v53  ;;  %v117_v59 = vpop.f32.mrf.mxu1 }
  0xad   :  { %197 = vtanh.f32 %v120_v54 }
  0xaf   :  { %v161_v55 = vpop.f32.mrf.mxu2 }
  0xb0   :  { %v164_v56 = vmul.f32 1.442695, %v161_v55 }
  0xb2   :  { %199 = vpow2.f32 %v164_v56 }
  0xb3   :  { %v198_v57 = vpop.eup %197 }
  0xb4   :  { %v122_v58 = vmul.f32 0.5, %v198_v57 }
  0xb6   :  { %v123_v60 = vadd.f32 0.5, %v122_v58 }
  0xb8   :  { %v200_v61 = vpop.eup %199 }
  0xb9   :  { %v166_v62 = vsub.f32 %v117_v59, %v200_v61 }
  0xbb   :  { %v167_v63 = vmul.f32 %v166_v62, %v123_v60 }
  0xbd   :  { %v168_v0 = vadd.f32 %v200_v61, %v167_v63 }
  0xbf   :  { %169 = vst [vmem:[#allocation7] sm:$0xff] %v168_v0 }
  0xc0   :  { %180 = dma.vmem_to_hbm [thread:$0]  %s176_s26, 128, %s178_s29, [#allocation4]  }
  0xc1   :  { %277 = dma.done.wait [#allocation4], 128  }
  0xc2   :  { %278 = vsyncadd [#allocation4], 4294967168 }
  0xc3   :  { %185 = vsyncpa [#allocation3], 1 }
  0xc4   :  { %186 = vsyncpa [#allocation6], 1 }
  0xc5   :  { %187 = vsyncpa [#allocation4], 1 }

</bundles_post_ra>
